<compile_context>
chip_gen: v5e
topology: v5e:2x2
jax: 0.10.0
libtpu: 0.0.40
codegen_flags: <defaults>
</compile_context>

<pallas_src>
import math
import jax
import jax.numpy as jnp
from jax.experimental import pallas as pl
from jax.experimental.pallas import tpu as pltpu

NEG_SLOPE = 0.01  # F.leaky_relu default negative_slope
LANE = 128
SUBLANE = 8


def _round_up(x, m):
    return (x + m - 1) // m * m


def _leaky_relu(v):
    return jnp.where(v >= 0, v, NEG_SLOPE * v)


# --------------------------------------------------------------------------
# Kernel: 3-layer MLP on a tile of pre-imputed rows.  bf16 MXU matmuls with
# f32 accumulation; biases and leaky_relu in f32 (v5e has no bf16 VPU).
# --------------------------------------------------------------------------
def teacher_kernel(x_ref, w1_ref, b1_ref, w2_ref, b2_ref, w3_ref, b3_ref,
                   h1_ref, h2_ref, h3_ref):
    x = x_ref[...]  # already NaN-imputed in the wrapper fusion

    # h1 = linear1(x)  (no activation; returned as middle representation)
    h1 = jnp.dot(x.astype(jnp.bfloat16), w1_ref[...],
                 preferred_element_type=jnp.float32) + b1_ref[...]
    h1_ref[...] = h1.astype(h1_ref.dtype)

    # dropout -> identity (eval mode); h2 = leaky_relu(linear2(h1))
    h2 = _leaky_relu(
        jnp.dot(h1.astype(jnp.bfloat16), w2_ref[...],
                preferred_element_type=jnp.float32) + b2_ref[...])
    h2_ref[...] = h2.astype(h2_ref.dtype)

    # dropout -> identity (eval mode); h3 = leaky_relu(linear3(h2))
    h3 = _leaky_relu(
        jnp.dot(h2.astype(jnp.bfloat16), w3_ref[...],
                preferred_element_type=jnp.float32) + b3_ref[...])
    h3_ref[...] = h3.astype(h3_ref.dtype)


# --------------------------------------------------------------------------
# Tiling / VMEM helpers
# --------------------------------------------------------------------------
def _choose_tile(n_rows, tm):
    """Row tile: large (HBM-bound amortization), multiple of 8, and >= 2 grid
    steps when there are enough rows (so v7x megacore gets both cores)."""
    tm = _round_up(max(int(tm), SUBLANE), SUBLANE)
    n_sub = _round_up(max(int(n_rows), 1), SUBLANE)
    tile = min(tm, n_sub)
    if tile >= n_sub and n_sub >= 2 * SUBLANE:
        tile = _round_up(pl.cdiv(n_sub, 2), SUBLANE)
    return tile


def _vmem_tile_bytes(rows, cols, itemsize):
    """VMEM footprint of a 2-D buffer incl. (sublane, lane) layout padding."""
    packing = max(1, 4 // itemsize)
    r = _round_up(max(int(rows), 1), SUBLANE * packing)
    c = _round_up(max(int(cols), 1), LANE)
    return r * c * itemsize


def _vmem_budget_bytes(tile, in_c, hid_c, out_c, out_itemsize):
    # Streamed row tiles: default double-buffered by the pipeline.
    stream = 2 * (_vmem_tile_bytes(tile, in_c, 4)
                  + 2 * _vmem_tile_bytes(tile, hid_c, out_itemsize)
                  + _vmem_tile_bytes(tile, out_c, out_itemsize))
    # Weights/biases: constant index_map + Buffered(1) -> single resident copy.
    resident = (_vmem_tile_bytes(in_c, hid_c, 2)
                + _vmem_tile_bytes(hid_c, hid_c, 2)
                + _vmem_tile_bytes(hid_c, out_c, 2)
                + 2 * _vmem_tile_bytes(1, hid_c, 4)
                + _vmem_tile_bytes(1, out_c, 4))
    # In-kernel f32 intermediates (h1/h2/h3 before store) + fixed slack.
    interm = (2 * _vmem_tile_bytes(tile, hid_c, 4)
              + _vmem_tile_bytes(tile, out_c, 4))
    return stream + resident + interm + (2 << 20)


def _vmem_cap_bytes():
    """Generation-aware VMEM cap: physical capacity minus 16 MiB headroom
    (~48 MiB on v7x, ~112 MiB on v5e/v6e)."""
    try:
        cap = int(pltpu.get_tpu_info().vmem_capacity_bytes)
    except Exception:
        cap = 64 << 20  # conservative fallback: v7x per-core physical VMEM
    return max(cap - (16 << 20), 32 << 20)


# --------------------------------------------------------------------------
# One-time parameter preparation (hoisted out of the forward path): bf16
# weights for the MXU, f32 row-vector biases for the f32 accumulation path.
# --------------------------------------------------------------------------
def prepare_params(params):
    def bias2d(b):
        return jnp.asarray(b, dtype=jnp.float32).reshape(1, -1)

    return {
        "w1": jnp.asarray(params["w1"]).astype(jnp.bfloat16),
        "w2": jnp.asarray(params["w2"]).astype(jnp.bfloat16),
        "w3": jnp.asarray(params["w3"]).astype(jnp.bfloat16),
        "b1": bias2d(params["b1"]),
        "b2": bias2d(params["b2"]),
        "b3": bias2d(params["b3"]),
    }


# --------------------------------------------------------------------------
# Forward: returns (h3, [h1, h2, h3]) matching the PyTorch module (eval mode).
# `prepared` comes from prepare_params() (call once, reuse across forwards).
# --------------------------------------------------------------------------
def teacher_features_forward(x, idx, imp_features, prepared, *,
                             tm=512, out_dtype=None):
    N, IN = x.shape
    HID = prepared["w1"].shape[1]
    OUT = prepared["w3"].shape[1]
    out_dtype = jnp.dtype(x.dtype if out_dtype is None else out_dtype)

    # ---- row tiling -------------------------------------------------------
    tile = _choose_tile(N, tm)
    cap = _vmem_cap_bytes()
    budget = _vmem_budget_bytes(tile, IN, HID, OUT, out_dtype.itemsize)
    while tile > SUBLANE and budget > cap:   # shrink tile if VMEM-bound
        tile = max(SUBLANE, _round_up(tile // 2, SUBLANE))
        budget = _vmem_budget_bytes(tile, IN, HID, OUT, out_dtype.itemsize)
    vmem_limit = int(min(cap, max(budget + budget // 2, 32 << 20)))

    grid_n = pl.cdiv(N, tile)
    N_P = grid_n * tile

    # ---- gather + NaN imputation + row pad: one XLA fusion ----------------
    # pe_feat._indices()[1] gather is data-dependent -> glue in JAX; folding
    # the isnan/where into the same fusion means the kernel streams a single
    # [N_P, IN] input instead of x + imp_gathered (halves the row-input bytes).
    # TODO(synk): for a resident-table in-kernel gather see header note.
    imp_rows = jnp.take(imp_features, idx, axis=0).astype(x.dtype)
    xf = jnp.where(jnp.isnan(x), imp_rows, x)
    xf = jnp.pad(xf, ((0, N_P - N), (0, 0)))   # padded rows are 0.0 (inert)

    # ---- BlockSpecs --------------------------------------------------------
    # Feature dims are left at their true widths (block dim == full array dim
    # is legal); only the row dim of x / outputs is tiled.
    def row_spec(cols):
        return pl.BlockSpec((tile, cols), lambda i: (i, 0))

    def const_spec(rows, cols):
        # Constant-index, resident across the grid -> one buffer is enough.
        return pl.BlockSpec((rows, cols), lambda i: (0, 0),
                            pipeline_mode=pl.Buffered(1))

    h1, h2, h3 = pl.pallas_call(
        teacher_kernel,
        grid=(grid_n,),
        in_specs=[
            row_spec(IN),              # pre-imputed x tile
            const_spec(IN, HID),       # W1 (bf16, resident)
            const_spec(1, HID),        # b1
            const_spec(HID, HID),      # W2
            const_spec(1, HID),        # b2
            const_spec(HID, OUT),      # W3
            const_spec(1, OUT),        # b3
        ],
        out_specs=[
            row_spec(HID),             # h1 (true width -> minimal writeback)
            row_spec(HID),             # h2
            row_spec(OUT),             # h3
        ],
        out_shape=[
            jax.ShapeDtypeStruct((N_P, HID), out_dtype),
            jax.ShapeDtypeStruct((N_P, HID), out_dtype),
            jax.ShapeDtypeStruct((N_P, OUT), out_dtype),
        ],
        compiler_params=pltpu.CompilerParams(
            dimension_semantics=("parallel",),   # megacore sharding on v7x
            vmem_limit_bytes=vmem_limit),
    )(xf, prepared["w1"], prepared["b1"], prepared["w2"], prepared["b2"],
      prepared["w3"], prepared["b3"])

    h1, h2, h3 = h1[:N], h2[:N], h3[:N]   # no-ops when N is tile-aligned
    middle_representation = [h1, h2, h3]
    return h3, middle_representation


# --------------------------------------------------------------------------
# Synthetic init mirroring the module's __init__ + a pure-JAX f32 reference.
# --------------------------------------------------------------------------
def init_params(key, nbr_nodes, in_c, hid_c, out_c):
    k_imp, k1, k2, k3 = jax.random.split(key, 4)

    # xavier_uniform with gain=1.414 for imp_features
    bound_imp = 1.414 * math.sqrt(6.0 / (nbr_nodes + in_c))
    imp_features = jax.random.uniform(
        k_imp, (nbr_nodes, in_c), jnp.float32, -bound_imp, bound_imp)

    # kaiming_uniform(fan_in, leaky_relu) -> bound = sqrt(2) * sqrt(3 / fan_in)
    def kaiming(k, fan_in, shape):
        bound = math.sqrt(2.0) * math.sqrt(3.0 / fan_in)
        return jax.random.uniform(k, shape, jnp.float32, -bound, bound)

    params = {
        "w1": kaiming(k1, in_c, (in_c, hid_c)),
        "b1": jnp.zeros((1, hid_c), jnp.float32),
        "w2": kaiming(k2, hid_c, (hid_c, hid_c)),
        "b2": jnp.zeros((1, hid_c), jnp.float32),
        "w3": kaiming(k3, hid_c, (hid_c, out_c)),
        "b3": jnp.zeros((1, out_c), jnp.float32),
    }
    return imp_features, params


def _reference(x, idx, imp_features, params):
    """Pure-JAX f32 reference of the module's forward (eval mode)."""
    imp = jnp.take(imp_features, idx, axis=0)
    xf = jnp.where(jnp.isnan(x), imp, x)
    h1 = xf @ params["w1"] + params["b1"]
    h2 = _leaky_relu(h1 @ params["w2"] + params["b2"])
    h3 = _leaky_relu(h2 @ params["w3"] + params["b3"])
    return h1, h2, h3


if __name__ == "__main__":
    key = jax.random.PRNGKey(0)
    nbr_nodes, in_c, hid_c, out_c = 16, 32, 32, 16
    N = 16  # number of rows in x (== len(pe_feat._indices()[1]))

    k_params, k_x, k_nan, k_idx = jax.random.split(key, 4)
    imp_features, params = init_params(k_params, nbr_nodes, in_c, hid_c, out_c)

    x = jax.random.normal(k_x, (N, in_c), jnp.float32)
    # deterministically inject NaNs to exercise the imputation path
    nan_mask = jax.random.bernoulli(k_nan, 0.2, (N, in_c))
    x = jnp.where(nan_mask, jnp.nan, x)

    # column indices of the sparse pe_feat tensor (one per row of x)
    idx = jax.random.randint(k_idx, (N,), 0, nbr_nodes)

    # One-time parameter prep (bf16 weights), then a jitted forward so the
    # wrapper gather/imputation/pad fuse into a single XLA fusion.
    prepped = prepare_params(params)
    fwd = jax.jit(teacher_features_forward)

    h3, mids = fwd(x, idx, imp_features, prepped)
    jax.block_until_ready(h3)

    assert h3.shape == (N, out_c)
    assert mids[0].shape == (N, hid_c) and mids[1].shape == (N, hid_c)
    assert not bool(jnp.any(jnp.isnan(h3)))  # NaNs were imputed before the MLP

    # Loose tolerance: kernel uses bf16 MXU inputs with f32 accumulation.
    r1, r2, r3 = _reference(x, idx, imp_features, params)
    assert bool(jnp.allclose(mids[0], r1, rtol=0.1, atol=0.1))
    assert bool(jnp.allclose(mids[1], r2, rtol=0.1, atol=0.1))
    assert bool(jnp.allclose(h3, r3, rtol=0.1, atol=0.1))
    print("KERNEL_OK")
</pallas_src>

<mosaic_0001>
module attributes {stable_mosaic.version = 11 : i64} {
  func.func @teacher_kernel(%arg0: i32, %arg1: memref<8x32xf32, #tpu.memory_space<vmem>>, %arg2: memref<32x32xbf16, #tpu.memory_space<vmem>>, %arg3: memref<1x32xf32, #tpu.memory_space<vmem>>, %arg4: memref<32x32xbf16, #tpu.memory_space<vmem>>, %arg5: memref<1x32xf32, #tpu.memory_space<vmem>>, %arg6: memref<32x16xbf16, #tpu.memory_space<vmem>>, %arg7: memref<1x16xf32, #tpu.memory_space<vmem>>, %arg8: memref<8x32xf32, #tpu.memory_space<vmem>>, %arg9: memref<8x32xf32, #tpu.memory_space<vmem>>, %arg10: memref<8x16xf32, #tpu.memory_space<vmem>>) attributes {dimension_semantics = [#tpu.dimension_semantics<parallel>], iteration_bounds = array<i64: 2>, scalar_prefetch = 0 : i64, scratch_operands = 0 : i64, tpu.core_type = #tpu.core_type<tc>, window_params = [{transform_indices = @transform_0, window_bounds = array<i64: 8, 32>}, {pipeline_mode = #tpu.pipeline_mode<synchronous>, transform_indices = @transform_1, window_bounds = array<i64: 32, 32>}, {pipeline_mode = #tpu.pipeline_mode<synchronous>, transform_indices = @transform_2, window_bounds = array<i64: 1, 32>}, {pipeline_mode = #tpu.pipeline_mode<synchronous>, transform_indices = @transform_3, window_bounds = array<i64: 32, 32>}, {pipeline_mode = #tpu.pipeline_mode<synchronous>, transform_indices = @transform_4, window_bounds = array<i64: 1, 32>}, {pipeline_mode = #tpu.pipeline_mode<synchronous>, transform_indices = @transform_5, window_bounds = array<i64: 32, 16>}, {pipeline_mode = #tpu.pipeline_mode<synchronous>, transform_indices = @transform_6, window_bounds = array<i64: 1, 16>}, {transform_indices = @transform_7, window_bounds = array<i64: 8, 32>}, {transform_indices = @transform_8, window_bounds = array<i64: 8, 32>}, {transform_indices = @transform_9, window_bounds = array<i64: 8, 16>}]} {
    %c0 = arith.constant 0 : index
    %c0_0 = arith.constant 0 : index
    %0 = vector.load %arg1[%c0, %c0_0] : memref<8x32xf32, #tpu.memory_space<vmem>>, vector<8x32xf32>
    %1 = arith.truncf %0 : vector<8x32xf32> to vector<8x32xbf16>
    %c0_1 = arith.constant 0 : index
    %c0_2 = arith.constant 0 : index
    %2 = vector.load %arg2[%c0_1, %c0_2] : memref<32x32xbf16, #tpu.memory_space<vmem>>, vector<32x32xbf16>
    %cst = arith.constant dense<0.000000e+00> : vector<8x32xf32>
    %3 = tpu.matmul %1, %2, %cst {dimension_numbers = #tpu.dot_dimension_numbers<[1], [0], [0], [1], [0, 0, 1, 1], [], []>} : vector<8x32xbf16>, vector<32x32xbf16>, vector<8x32xf32> -> vector<8x32xf32>
    %c0_3 = arith.constant 0 : index
    %c0_4 = arith.constant 0 : index
    %4 = vector.load %arg3[%c0_3, %c0_4] : memref<1x32xf32, #tpu.memory_space<vmem>>, vector<1x32xf32>
    %5 = vector.broadcast %4 : vector<1x32xf32> to vector<8x32xf32>
    %6 = arith.addf %3, %5 : vector<8x32xf32>
    %c0_5 = arith.constant 0 : index
    %c0_6 = arith.constant 0 : index
    %7 = vector.load %arg8[%c0_5, %c0_6] : memref<8x32xf32, #tpu.memory_space<vmem>>, vector<8x32xf32>
    tpu.vector_store %arg8[%c0_5, %c0_6], %6 {strides = array<i32>} : memref<8x32xf32, #tpu.memory_space<vmem>>, vector<8x32xf32>,
    %8 = arith.truncf %6 : vector<8x32xf32> to vector<8x32xbf16>
    %c0_7 = arith.constant 0 : index
    %c0_8 = arith.constant 0 : index
    %9 = vector.load %arg4[%c0_7, %c0_8] : memref<32x32xbf16, #tpu.memory_space<vmem>>, vector<32x32xbf16>
    %cst_9 = arith.constant dense<0.000000e+00> : vector<8x32xf32>
    %10 = tpu.matmul %8, %9, %cst_9 {dimension_numbers = #tpu.dot_dimension_numbers<[1], [0], [0], [1], [0, 0, 1, 1], [], []>} : vector<8x32xbf16>, vector<32x32xbf16>, vector<8x32xf32> -> vector<8x32xf32>
    %c0_10 = arith.constant 0 : index
    %c0_11 = arith.constant 0 : index
    %11 = vector.load %arg5[%c0_10, %c0_11] : memref<1x32xf32, #tpu.memory_space<vmem>>, vector<1x32xf32>
    %12 = vector.broadcast %11 : vector<1x32xf32> to vector<8x32xf32>
    %13 = arith.addf %10, %12 : vector<8x32xf32>
    %cst_12 = arith.constant 0.000000e+00 : f32
    %14 = vector.broadcast %cst_12 : f32 to vector<8x32xf32>
    %15 = arith.cmpf oge, %13, %14 : vector<8x32xf32>
    %cst_13 = arith.constant 0.00999999977 : f32
    %16 = vector.broadcast %cst_13 : f32 to vector<8x32xf32>
    %17 = arith.mulf %16, %13 : vector<8x32xf32>
    %18 = arith.select %15, %13, %17 : vector<8x32xi1>, vector<8x32xf32>
    %c0_14 = arith.constant 0 : index
    %c0_15 = arith.constant 0 : index
    %19 = vector.load %arg9[%c0_14, %c0_15] : memref<8x32xf32, #tpu.memory_space<vmem>>, vector<8x32xf32>
    tpu.vector_store %arg9[%c0_14, %c0_15], %18 {strides = array<i32>} : memref<8x32xf32, #tpu.memory_space<vmem>>, vector<8x32xf32>,
    %20 = arith.truncf %18 : vector<8x32xf32> to vector<8x32xbf16>
    %c0_16 = arith.constant 0 : index
    %c0_17 = arith.constant 0 : index
    %21 = vector.load %arg6[%c0_16, %c0_17] : memref<32x16xbf16, #tpu.memory_space<vmem>>, vector<32x16xbf16>
    %cst_18 = arith.constant dense<0.000000e+00> : vector<8x16xf32>
    %22 = tpu.matmul %20, %21, %cst_18 {dimension_numbers = #tpu.dot_dimension_numbers<[1], [0], [0], [1], [0, 0, 1, 1], [], []>} : vector<8x32xbf16>, vector<32x16xbf16>, vector<8x16xf32> -> vector<8x16xf32>
    %c0_19 = arith.constant 0 : index
    %c0_20 = arith.constant 0 : index
    %23 = vector.load %arg7[%c0_19, %c0_20] : memref<1x16xf32, #tpu.memory_space<vmem>>, vector<1x16xf32>
    %24 = vector.broadcast %23 : vector<1x16xf32> to vector<8x16xf32>
    %25 = arith.addf %22, %24 : vector<8x16xf32>
    %cst_21 = arith.constant 0.000000e+00 : f32
    %26 = vector.broadcast %cst_21 : f32 to vector<8x16xf32>
    %27 = arith.cmpf oge, %25, %26 : vector<8x16xf32>
    %cst_22 = arith.constant 0.00999999977 : f32
    %28 = vector.broadcast %cst_22 : f32 to vector<8x16xf32>
    %29 = arith.mulf %28, %25 : vector<8x16xf32>
    %30 = arith.select %27, %25, %29 : vector<8x16xi1>, vector<8x16xf32>
    %c0_23 = arith.constant 0 : index
    %c0_24 = arith.constant 0 : index
    %31 = vector.load %arg10[%c0_23, %c0_24] : memref<8x16xf32, #tpu.memory_space<vmem>>, vector<8x16xf32>
    tpu.vector_store %arg10[%c0_23, %c0_24], %30 {strides = array<i32>} : memref<8x16xf32, #tpu.memory_space<vmem>>, vector<8x16xf32>,
    return
  }
  func.func @transform_0(%arg0: i32) -> (i32, i32) {
    %c0_i32 = arith.constant 0 : i32
    %c0_i32_0 = arith.constant 0 : i32
    return %arg0, %c0_i32 : i32, i32
  }
  func.func @transform_1(%arg0: i32) -> (i32, i32) {
    %c0_i32 = arith.constant 0 : i32
    %c0_i32_0 = arith.constant 0 : i32
    %c0_i32_1 = arith.constant 0 : i32
    return %c0_i32, %c0_i32_0 : i32, i32
  }
  func.func @transform_2(%arg0: i32) -> (i32, i32) {
    %c0_i32 = arith.constant 0 : i32
    %c0_i32_0 = arith.constant 0 : i32
    %c0_i32_1 = arith.constant 0 : i32
    return %c0_i32, %c0_i32_0 : i32, i32
  }
  func.func @transform_3(%arg0: i32) -> (i32, i32) {
    %c0_i32 = arith.constant 0 : i32
    %c0_i32_0 = arith.constant 0 : i32
    %c0_i32_1 = arith.constant 0 : i32
    return %c0_i32, %c0_i32_0 : i32, i32
  }
  func.func @transform_4(%arg0: i32) -> (i32, i32) {
    %c0_i32 = arith.constant 0 : i32
    %c0_i32_0 = arith.constant 0 : i32
    %c0_i32_1 = arith.constant 0 : i32
    return %c0_i32, %c0_i32_0 : i32, i32
  }
  func.func @transform_5(%arg0: i32) -> (i32, i32) {
    %c0_i32 = arith.constant 0 : i32
    %c0_i32_0 = arith.constant 0 : i32
    %c0_i32_1 = arith.constant 0 : i32
    return %c0_i32, %c0_i32_0 : i32, i32
  }
  func.func @transform_6(%arg0: i32) -> (i32, i32) {
    %c0_i32 = arith.constant 0 : i32
    %c0_i32_0 = arith.constant 0 : i32
    %c0_i32_1 = arith.constant 0 : i32
    return %c0_i32, %c0_i32_0 : i32, i32
  }
  func.func @transform_7(%arg0: i32) -> (i32, i32) {
    %c0_i32 = arith.constant 0 : i32
    %c0_i32_0 = arith.constant 0 : i32
    return %arg0, %c0_i32 : i32, i32
  }
  func.func @transform_8(%arg0: i32) -> (i32, i32) {
    %c0_i32 = arith.constant 0 : i32
    %c0_i32_0 = arith.constant 0 : i32
    return %arg0, %c0_i32 : i32, i32
  }
  func.func @transform_9(%arg0: i32) -> (i32, i32) {
    %c0_i32 = arith.constant 0 : i32
    %c0_i32_0 = arith.constant 0 : i32
    return %arg0, %c0_i32 : i32, i32
  }
}

</mosaic_0001>

<bundles_post_ra>
// kernel: teacher_features_forward.1
= control target key start
LH: loop header
LB: loop body
LE: loop exit
PB: predicated region body
PF: predicated region fallthrough
CT: control target
= control target key end

     0   :  { %s1016_s0 = inlined_call_operand.vmem [shape: f32[16,32], index: 0, kind: input, shape index: {}]   ;;  %s1017_s1 = inlined_call_operand.vmem [shape: bf16[32,32], index: 1, kind: input, shape index: {}]   ;;  %s1018_s2 = inlined_call_operand.vmem [shape: f32[1,32], index: 2, kind: input, shape index: {}]   ;;  %s1019_s3 = inlined_call_operand.vmem [shape: bf16[32,32], index: 3, kind: input, shape index: {}]   ;;  %s1020_s4 = inlined_call_operand.vmem [shape: f32[1,32], index: 4, kind: input, shape index: {}]   ;;  %s1021_s5 = inlined_call_operand.vmem [shape: bf16[32,16], index: 5, kind: input, shape index: {}]   ;;  %s1022_s6 = inlined_call_operand.vmem [shape: f32[1,16], index: 6, kind: input, shape index: {}]   ;;  %s1023_s7 = inlined_call_operand.hbm [shape: f32[16,32], index: 7, kind: output, shape index: {0}]   ;;  %s1024_s8 = inlined_call_operand.hbm [shape: f32[16,32], index: 8, kind: output, shape index: {1}]   ;;  %s1025_s9 = inlined_call_operand.vmem [shape: f32[16,16], index: 9, kind: output, shape index: {2}]  }
   0x1   :  { %1027 = sst [smem:[#allocation8_spill]] %s1016_s0 }
   0x2   :  { %1028 = sst [smem:[#allocation9_spill]] %s1017_s1 }
   0x3   :  { %1029 = sst [smem:[#allocation10_spill]] %s1018_s2 }
   0x4   :  { %1030 = sst [smem:[#allocation11_spill]] %s1019_s3 }
   0x5   :  { %1031 = sst [smem:[#allocation12_spill]] %s1020_s4 }
   0x6   :  { %1032 = sst [smem:[#allocation13_spill]] %s1021_s5 }
   0x7   :  { %15 = vsyncpa [#allocation3], 0 }
   0x8   :  { %17 = vsyncpa [#allocation3 + $0x1], 0 }
   0x9   :  { %18 = vsyncpa [#allocation5], 0 }
   0xa   :  { %20 = vsyncpa [#allocation5 + $0x1], 0  ;;  %s871_s30 = smov 0   ;;  %s873_s10 = smov 0  }
   0xb   :  { %s875_s11 = smov 0   ;;  %s877_s12 = smov 0  }
   0xc LB: > { %s892_s13 = sadd.s32 4294967295, %s819_s12   ;;  %s631_s14 = sadd.s32 4294967294, %s819_s12   ;;  %s819_s12 = sphi %s877_s12, %s1045_s12   ;;  %s815_s11 = sphi %s875_s11, %s1044_s11   ;;  %s811_s10 = sphi %s873_s10, %s1043_s10   ;;  %s807_s30 = sphi %s871_s30, %s1042_s30  }
   0xd   : > { %s896_s15 = sadd.s32 1, %s819_s12   ;;  %s185_s16 = sadd.s32 1, %s815_s11 }
   0xe   : > { %s182_s17 = ssub.s32 %s819_s12, %s896_s15  ;;  %p195_p0 = scmp.ne.s32.totalorder %s815_s11, %s811_s10 }
   0xf   : > { %p183_p1 = scmp.eq.s32.totalorder %s182_s17, 0  ;;  %p196_p2 = scmp.eq.s32.totalorder %s892_s13, 1 }
  0x10   : > { %p201_p3 = scmp.ne.s32.totalorder %s811_s10, %s807_s30  ;;  %p202_p4 = scmp.eq.s32.totalorder %s631_s14, 1 }
  0x11   : > { %s907_s18 = scalar_select %p183_p1, %s815_s11, %s185_s16  }
  0x12   : > { %p909_p5 = por %p196_p2, %p195_p0  ;;  %p913_p6 = por %p202_p4, %p201_p3 }
  0x13   : > { %p634_p7 = scmp.ge.s32.totalorder %s819_s12, 1  ;;  %p297_p8 = scmp.lt.s32.totalorder %s819_s12, 3 }
  0x15   : > { %p298_p9 = pnand %p634_p7, %p297_p8 }
  0x16   : > { %s1035_s1 = sld [smem:[#allocation9_spill]] (!%p298_p9)  ;;  %p341_p10 = scmp.lt.s32.totalorder (!%p298_p9), %s892_s13, 1 }
  0x17   : > { %301 = sbr.rel (%p298_p9) target bundleno = 439 (0x1b7), region = 48  ;;  %s1036_s3 = sld [smem:[#allocation11_spill]] (!%p298_p9) }
  0x18   : > { %s1037_s0 = sld [smem:[#allocation8_spill]] (!%p298_p9)  ;;  %s943_s22 = sand.u32 (!%p298_p9), 1, %s811_s10  }
  0x19   : > { %s1038_s2 = sld [smem:[#allocation10_spill]] (!%p298_p9)  ;;  %s635_s25 = sshll.u32 (!%p298_p9), %s943_s22, 3 }
  0x1a   : > { %s327_s26 = scalar_lea.vmem (!%p298_p9), [#allocation2], %s635_s25  ;;  %s1039_s5 = sld [smem:[#allocation13_spill]] (!%p298_p9) }
  0x1b   : > { %s1040_s4 = sld [smem:[#allocation12_spill]] (!%p298_p9)  ;;  %s334_s24 = scalar_lea.vmem (!%p298_p9), [#allocation4], %s635_s25 }
  0x1c   : > { %v673_v0 = vld [vmem:[%s1035_s1 + $0x8] sm:$0xff]  ;;  %v672_v2 = vld [vmem:[%s1035_s1] sm:$0xff]  ;;  %s930_s27 = scalar_select %p341_p10, %s892_s13, 1  ;;  %vm372_vm0 = vcmask 261120  }
  0x1d   : > { %v675_v1 = vld [vmem:[%s1036_s3 + $0x8] sm:$0xff]  ;;  %382 = vmatpush.bf16.msra.mxu0 %v673_v0  ;;  %v674_v5 = vld [vmem:[%s1036_s3] sm:$0xff]  ;;  %s668_s29 = sshll.u32 %s892_s13, 3  ;;  %s474_s25 = scalar_lea.sflag [#allocation3], %s943_s22 }
  0x1e   : > { %420 = vmatpush.bf16.msra.mxu1 %v675_v1  ;;  %s1026_s28 = sshll.u32 %s930_s27, 3  ;;  %s493_s17 = scalar_lea.hbm %s1023_s7, %s668_s29 }
  0x1f   : > { %s344_s16 = scalar_lea.vmem %s1037_s0, %s1026_s28  ;;  %v722_v6 = vld [vmem:[%s1038_s2] ss:$0 sm:$0xff]  ;;  %s507_s28 = scalar_lea.hbm %s1024_s8, %s668_s29 }
  0x20   : > { %v350_v3 = vld [vmem:[%s344_s16] sm:$0xff]  ;;  %v677_v11 = vld [vmem:[%s1039_s5 + $0x8] sm:$0xff]  ;;  %s495_s0 = sshll.u32 %s327_s26, 4  ;;  %s497_s1 = sshll.u32 %s493_s17, 4  ;;  %s496_s0 = int_to_ptr.vmem [resolvable:$true] %s495_s0  ;;  %s498_s1 = int_to_ptr.hbm [resolvable:$true] %s497_s1 }
  0x21   : > { %383 = vmatpush.bf16.msra.mxu0 %v672_v2  ;;  %v351_v4 = vpack.c.bf16 %v350_v3, %v350_v3  ;;  %461 = vmatpush.bf16.msra.mxu2 %v677_v11  ;;  %v676_v12 = vld [vmem:[%s1039_s5] sm:$0xff]  ;;  %s739_s2 = sshra.s32 %s498_s1, 4  ;;  %s745_s14 = scalar_lea.hbm %s1023_s7, 16  ;;  %s740_s2 = int_to_ptr.hbm [resolvable:$true] %s739_s2 }
  0x22   : > { %421 = vmatpush.bf16.msra.mxu1 %v674_v5  ;;  %v723_v13 = vld [vmem:[%s1040_s4] ss:$0 sm:$0xff]  ;;  %s741_s3 = scalar_lea.hbm %s740_s2, 8  ;;  %p746_p0 = scmp.lt.s32.totalorder %s740_s2, %s1023_s7 }
  0x23   : > { %p742_p11 = scmp.ne.s32.totalorder %s740_s2, %s741_s3  ;;  %p747_p1 = scmp.lt.s32.totalorder %s745_s14, %s741_s3 }
  0x24   : > { %647 = vmatmul.msk.bf16.vlgmr.msra.gmra.mxu0 %vm372_vm0, %v351_v4 }
  0x25   : > { %462 = vmatpush.bf16.msra.mxu2 %v676_v12  ;;  %p743_p12 = pnand %p742_p11, %p909_p5  ;;  %p748_p2 = por %p747_p1, %p746_p0 }
  0x27   : > { %p744_p13 = pneg %p743_p12 }
  0x29   : > { %p749_p3 = pnand %p748_p2, %p744_p13 }
  0xa1   : > { %v385_v7 = vpop.f32.mrf.mxu0 }
  0xa2   : > { %v386_v8 = vadd.f32 %v722_v6, %v385_v7 }
  0xa4   : > { %v390_v9 = vpack.c.bf16 %v386_v8, %v386_v8  ;;  %389 = vst.msk [vmem:[%s327_s26] sm:$0xff] %vm372_vm0, %v386_v8 }
  0xa6   : > { %656 = vmatmul.msk.bf16.vlgmr.msra.gmra.mxu1 %vm372_vm0, %v390_v9 }
  0xa9   : > { %v387_v10 = vpop.f32.mrf.mxu0 }
 0x123   : > { %v423_v14 = vpop.f32.mrf.mxu1 }
 0x124   : > { %v424_v15 = vadd.f32 %v723_v13, %v423_v14 }
 0x126   : > { %vm427_vm1 = vcmp.ge.f32.partialorder %v424_v15, 0.0  ;;  %v428_v16 = vmul.f32 0.01, %v424_v15 }
 0x128   : > { %v429_v17 = vsel %vm427_vm1, %v424_v15, %v428_v16 }
 0x129   : > { %v431_v18 = vpack.c.bf16 %v429_v17, %v429_v17  ;;  %430 = vst.msk [vmem:[%s334_s24] sm:$0xff] %vm372_vm0, %v429_v17 }
 0x12b   : > { %v425_v19 = vpop.f32.mrf.mxu1  ;;  %665 = vmatmul.msk.bf16.vlgmr.msra.gmra.mxu2 %vm372_vm0, %v431_v18 }
 0x12c   : > { %752 = shalt.err (!%p749_p3)
}
 0x12d   : > { %678 = dma.vmem_to_hbm [thread:$0]  (%p909_p5), %s496_s0, 128, %s498_s1, %s474_s25  }
 0x12e   : > { %s509_s26 = sshll.u32 %s334_s24, 4  ;;  %s511_s29 = sshll.u32 %s507_s28, 4  ;;  %s510_s26 = int_to_ptr.vmem [resolvable:$true] %s509_s26  ;;  %s512_s29 = int_to_ptr.hbm [resolvable:$true] %s511_s29 }
 0x12f   : > { %s479_s17 = scalar_lea.sflag [#allocation5], %s943_s22  ;;  %s767_s4 = sshra.s32 %s512_s29, 4  ;;  %s768_s4 = int_to_ptr.hbm [resolvable:$true] %s767_s4 }
 0x130   : > { %s769_s21 = scalar_lea.hbm %s768_s4, 8  ;;  %s773_s5 = scalar_lea.hbm %s1024_s8, 16 }
 0x131   : > { %p770_p4 = scmp.ne.s32.totalorder %s768_s4, %s769_s21  ;;  %p774_p9 = scmp.lt.s32.totalorder %s768_s4, %s1024_s8 }
 0x132   : > { %p775_p10 = scmp.lt.s32.totalorder %s773_s5, %s769_s21 }
 0x133   : > { %p771_p7 = pnand %p770_p4, %p909_p5 }
 0x134   : > { %p776_p11 = por %p775_p10, %p774_p9 }
 0x135   : > { %p772_p8 = pneg %p771_p7 }
 0x137   : > { %p777_p12 = pnand %p776_p11, %p772_p8 }
 0x139   : > { %780 = shalt.err (!%p777_p12)
}
 0x13a   : > { %679 = dma.vmem_to_hbm [thread:$0]  (%p909_p5), %s510_s26, 128, %s512_s29, %s479_s17   ;;  %v724_v20 = vld [vmem:[%s1022_s6] ss:$0 sm:$0xff]  ;;  %vm471_vm3 = vcmask 130048  }
 0x13b   : > { %s1041_s28 = sshll.u32 %s930_s27, 3 }
 0x13c   : > { %s348_s25 = scalar_lea.vmem %s1025_s9, %s1041_s28 }
 0x1ae   : > { %v464_v21 = vpop.f32.mrf.mxu2 }
 0x1af   : > { %v465_v22 = vadd.f32 %v724_v20, %v464_v21 }
 0x1b1   : > { %vm468_vm2 = vcmp.ge.f32.partialorder %v465_v22, 0.0  ;;  %v469_v23 = vmul.f32 0.01, %v465_v22 }
 0x1b3   : > { %v470_v24 = vsel %vm468_vm2, %v465_v22, %v469_v23 }
 0x1b4   : > { %472 = vst.msk [vmem:[%s348_s25] sm:$0xff] %vm471_vm3, %v470_v24 }
 0x1b6   : > { %v466_v25 = vpop.f32.mrf.mxu2 }
 0x1b7 PF: > { %p689_p5 = scmp.ge.s32.totalorder %s819_s12, 2  ;;  %s526_s19 = sand.u32 1, %s807_s30  }
 0x1b8   : > { %s527_s27 = scalar_lea.sflag [#allocation3], %s526_s19 }
 0x1b9   : > { %p683_p13 = pnand %p689_p5, %p913_p6 }
 0x1bb   : > { %p684_p0 = pneg %p683_p13 }
 0x1bd   : > { %798 = dma.done.wait (%p684_p0), %s527_s27, 128  }
 0x1be   : > { %800 = vsyncadd (%p684_p0), %s527_s27, 4294967168  ;;  %s537_s14 = scalar_lea.sflag [#allocation5], %s526_s19 }
 0x1bf   : > { %802 = dma.done.wait (%p684_p0), %s537_s14, 128  }
 0x1c0   : > { %804 = vsyncadd (%p684_p0), %s537_s14, 4294967168  ;;  %p23_p1 = scmp.ge.s32.totalorder %s896_s15, 4   ;;  %s1042_s30 = smov %s811_s10 }
 0x1c1   : > { %s1043_s10 = smov %s815_s11  ;;  %s1044_s11 = smov %s907_s18 }
 0x1c2   : > { %s1045_s12 = smov %s896_s15  ;;  %25 = sbr.rel (!%p23_p1) target bundleno = 12 (0xc), region = 112 }
 0x1c7   :  { %550 = vsyncpa [#allocation3], 1 }
 0x1c8   :  { %552 = vsyncpa [#allocation3 + $0x1], 1 }
 0x1c9   :  { %553 = vsyncpa [#allocation5], 1 }
 0x1ca   :  { %555 = vsyncpa [#allocation5 + $0x1], 1 }

</bundles_post_ra>
